<compile_context>
chip_gen: v7x
topology: tpu7x:2x2x1
jax: 0.10.0
libtpu: 0.0.40
codegen_flags: <defaults>
</compile_context>

<pallas_src>
import functools

import jax
import jax.numpy as jnp
from jax import lax
from jax.experimental import pallas as pl
from jax.experimental.pallas import tpu as pltpu


def _ceil_to(x: int, m: int) -> int:
    return ((x + m - 1) // m) * m


def _sublane_multiple(itemsize: int) -> int:
    if itemsize >= 4:
        return 8
    if itemsize == 2:
        return 16
    return 32


def _num_tensorcores() -> int:
    """Best-effort TensorCore count per chip (2 on v7x / megacore, else 1)."""
    try:
        info = pltpu.get_tpu_info()
        for name in ("num_tensorcores", "tensorcore_count", "num_cores", "core_count"):
            v = getattr(info, name, None)
            if v:
                return max(1, int(v))
    except Exception:  # pragma: no cover - defensive
        pass
    try:
        kind = jax.devices()[0].device_kind.lower()
        if any(tag in kind for tag in ("v7", "v5p", "v4")):
            return 2
    except Exception:  # pragma: no cover - defensive
        pass
    return 1


def _make_kernel(n_total: int, n_classes: int, tile_b: int, steps: int,
                 needs_mask: bool):
    """Build the kernel body with shape constants baked in."""

    def kernel(tgt_ref, preds_ref, out_ref, acc_s_ref, acc_n_ref):
        chunk = pl.program_id(0)   # "parallel" axis (sharded across TCs on v7x)
        step = pl.program_id(1)    # "arbitrary" reduction axis over batch tiles

        # Init per-chunk accumulators on the first reduction step.
        @pl.when(step == 0)
        def _():
            acc_s_ref[...] = jnp.zeros_like(acc_s_ref)
            acc_n_ref[...] = jnp.zeros_like(acc_n_ref)

        x = preds_ref[...].astype(jnp.float32)                 # (TB, C)

        # Numerically-stable logsumexp over the class (lane) axis.
        m = jnp.max(x, axis=-1, keepdims=True)                 # (TB, 1)
        lse = m + jnp.log(jnp.sum(jnp.exp(x - m), axis=-1, keepdims=True))

        # Smoothing term without materializing logp: -sum_c logp = C*lse - sum_c x
        sum_x = jnp.sum(x, axis=-1, keepdims=True)             # (TB, 1)
        smooth_per = n_classes * lse - sum_x                   # (TB, 1)

        # NLL term: -logp[target] = lse - x[target] (one-hot select, no gather).
        # (1, C) lane iota; broadcast against (TB, 1) targets.
        tgt = tgt_ref[...]                                     # (TB, 1) int32
        col = lax.broadcasted_iota(jnp.int32, (1, x.shape[-1]), 1)
        x_t = jnp.sum(jnp.where(col == tgt, x, 0.0), axis=-1, keepdims=True)
        nll_per = lse - x_t                                    # (TB, 1)

        if needs_mask:
            # Rows past N (edge-block padding / clamped duplicate blocks) are
            # zeroed out; the constant-false branch of where also absorbs any
            # NaN/Inf garbage produced from out-of-bounds block contents.
            base = (chunk * steps + step) * tile_b
            row = base + lax.broadcasted_iota(jnp.int32, (tile_b, 1), 0)
            valid = row < n_total
            smooth_per = jnp.where(valid, smooth_per, 0.0)
            nll_per = jnp.where(valid, nll_per, 0.0)

        # Cheap per-row vector accumulation; no scalar reduce in the hot loop.
        acc_s_ref[...] += smooth_per
        acc_n_ref[...] += nll_per

        # Finalize: single scalar reduce per chunk, written into a lane-dense
        # (8,128) output block (partials combined in the wrapper).
        @pl.when(step == steps - 1)
        def _():
            s_tot = jnp.sum(acc_s_ref[...])
            t_tot = jnp.sum(acc_n_ref[...])
            r = lax.broadcasted_iota(jnp.int32, (8, 128), 0)
            l = lax.broadcasted_iota(jnp.int32, (8, 128), 1)
            out_ref[...] = jnp.where(
                (r == 0) & (l == 0), s_tot,
                jnp.where((r == 0) & (l == 1), t_tot, 0.0))

    return kernel


@functools.partial(jax.jit, static_argnames=("epsilon", "tile_b"))
def cross_entropy_label_smooth(preds, target, *, epsilon: float = 0.1,
                               tile_b=None):
    """preds: (N, C) float logits; target: (N,) int class indices. Returns scalar f32."""
    n, c = preds.shape
    itemsize = jnp.dtype(preds.dtype).itemsize
    c_pad = _ceil_to(c, 128)                      # lane-padded class width in VMEM
    sub = _sublane_multiple(itemsize)             # sublane packing multiple

    # Per-generation VMEM capacity (v5e/v6e: 128 MiB, v7x: 64 MiB per TC).
    try:
        vmem_cap = int(pltpu.get_tpu_info().vmem_capacity_bytes)
    except Exception:  # pragma: no cover - conservative fallback
        vmem_cap = 64 * 1024 * 1024

    num_tc = _num_tensorcores()
    num_chunks = 2 if num_tc >= 2 else 1          # feed both TCs only on dual-TC chips

    # Bytes per batch row of working set:
    #  - double-buffered logits block (input dtype)
    #  - in-kernel f32 temporaries (upcast copy when itemsize<4, plus exp(x-m))
    #  - double-buffered (tb, 1) int32 targets (lane-padded to 128)
    #  - two (tb, 1) f32 accumulators (lane-padded to 128)
    per_row = 2 * c_pad * itemsize
    per_row += c_pad * 4 * (2 if itemsize < 4 else 1)
    per_row += 2 * 128 * 4
    per_row += 2 * 128 * 4

    if tile_b is None:
        budget = min(vmem_cap // 2, 32 * 1024 * 1024)
        tb = budget // per_row
        # Pipeline knee: beyond ~4 MiB per logits block there is no measurable gain.
        tb = min(tb, max(sub, (4 * 1024 * 1024) // max(c_pad * itemsize, 1)))
        # Keep >= ~4 grid steps per chunk so BlockSpec double-buffering overlaps.
        tb = min(tb, -(-n // (num_chunks * 4)))
        tb = min(tb, 2048)
    else:
        tb = int(tile_b)
    tb = max(sub, (tb // sub) * sub)
    tb = min(tb, _ceil_to(n, sub))                # don't tile bigger than the batch

    total_tiles = -(-n // tb)
    if total_tiles < 2:
        num_chunks = 1
    steps = -(-total_tiles // num_chunks)
    coverage = num_chunks * steps * tb            # rows logically covered by the grid
    needs_mask = coverage != n
    last_block = total_tiles - 1
    clamp_blocks = num_chunks * steps > total_tiles   # fully-OOB block indices exist

    def row_block_idx(ci, si):
        idx = ci * steps + si
        if clamp_blocks:
            # Re-read the last valid block for logically-out-of-range steps; the
            # kernel's row mask (computed from the *unclamped* logical index)
            # zeroes their contribution.  Revisiting the same block also lets
            # the pipeliner skip the duplicate DMA.
            idx = jnp.minimum(idx, last_block)
        return idx

    tgt2d = target.astype(jnp.int32).reshape(n, 1)

    needed = tb * per_row + 2 * num_chunks * 8 * 128 * 4
    vmem_limit = int(min(max(needed + (4 << 20), 32 << 20), vmem_cap * 3 // 4))

    kernel = _make_kernel(n, c, tb, steps, needs_mask)

    out = pl.pallas_call(
        kernel,
        out_shape=jax.ShapeDtypeStruct((num_chunks * 8, 128), jnp.float32),
        grid_spec=pltpu.PrefetchScalarGridSpec(
            num_scalar_prefetch=0,
            grid=(num_chunks, steps),
            in_specs=[
                pl.BlockSpec((tb, 1), lambda ci, si: (row_block_idx(ci, si), 0)),
                pl.BlockSpec((tb, c), lambda ci, si: (row_block_idx(ci, si), 0)),
            ],
            out_specs=pl.BlockSpec((8, 128), lambda ci, si: (ci, 0)),
            scratch_shapes=[
                pltpu.VMEM((tb, 1), jnp.float32),   # smooth-term row partials
                pltpu.VMEM((tb, 1), jnp.float32),   # nll-term row partials
            ],
        ),
        compiler_params=pltpu.CompilerParams(
            dimension_semantics=("parallel", "arbitrary"),
            vmem_limit_bytes=vmem_limit,
        ),
    )(tgt2d, preds)

    # Combine per-chunk partial sums and apply the label-smoothing mix.
    parts = out.reshape(num_chunks, 8, 128)
    smooth_sum = jnp.sum(parts[:, 0, 0])
    nll_sum = jnp.sum(parts[:, 0, 1])
    loss = smooth_sum / n
    nll = nll_sum / n
    return (epsilon * (loss / c) + (1.0 - epsilon) * nll).astype(jnp.float32)


def _reference(preds, target, epsilon=0.1):
    """Plain-JAX reference mirroring the PyTorch module (reduction='mean')."""
    n_classes = preds.shape[-1]
    logp = jax.nn.log_softmax(preds.astype(jnp.float32), axis=-1)
    loss = jnp.mean(-jnp.sum(logp, axis=-1))
    nll = jnp.mean(-jnp.take_along_axis(logp, target[:, None], axis=-1)[:, 0])
    return epsilon * (loss / n_classes) + (1.0 - epsilon) * nll


if __name__ == "__main__":
    key = jax.random.PRNGKey(0)
    k_logits, k_target = jax.random.split(key)

    # Small demo shapes consistent with the module (N, C) logits + (N,) targets.
    batch, num_classes = 16, 32
    preds = jax.random.normal(k_logits, (batch, num_classes), dtype=jnp.float32)
    target = jax.random.randint(k_target, (batch,), 0, num_classes, dtype=jnp.int32)
    out = jax.block_until_ready(
        cross_entropy_label_smooth(preds, target, epsilon=0.1))
    ref = _reference(preds, target, epsilon=0.1)
    assert jnp.allclose(out, ref, rtol=1e-5, atol=1e-5), (out, ref)

    # Ragged batch (N not a multiple of the tile): exercises the clamped
    # edge-block + row-masking path with NO wrapper-side logits padding.
    batch2, classes2 = 52, 40
    preds2 = jax.random.normal(k_logits, (batch2, classes2), dtype=jnp.float32)
    target2 = jax.random.randint(k_target, (batch2,), 0, classes2, dtype=jnp.int32)
    out2 = jax.block_until_ready(
        cross_entropy_label_smooth(preds2, target2, epsilon=0.1, tile_b=8))
    ref2 = _reference(preds2, target2, epsilon=0.1)
    assert jnp.allclose(out2, ref2, rtol=1e-5, atol=1e-5), (out2, ref2)

    # bf16 logits: exercises the 16-row sublane rounding and the f32-upcast
    # VMEM accounting path (kernel math stays in f32).
    batch3, classes3 = 40, 96
    preds3 = jax.random.normal(k_logits, (batch3, classes3),
                               dtype=jnp.float32).astype(jnp.bfloat16)
    target3 = jax.random.randint(k_target, (batch3,), 0, classes3, dtype=jnp.int32)
    out3 = jax.block_until_ready(
        cross_entropy_label_smooth(preds3, target3, epsilon=0.1))
    ref3 = _reference(preds3, target3, epsilon=0.1)
    assert jnp.allclose(out3, ref3, rtol=1e-4, atol=1e-4), (out3, ref3)

    print("KERNEL_OK")
</pallas_src>

<mosaic_0001>
module attributes {stable_mosaic.version = 11 : i64} {
  func.func @kernel(%arg0: i32, %arg1: i32, %arg2: memref<8x1xi32, #tpu.memory_space<vmem>>, %arg3: memref<8x32xf32, #tpu.memory_space<vmem>>, %arg4: memref<8x128xf32, #tpu.memory_space<vmem>>, %arg5: memref<8x1xf32, #tpu.memory_space<vmem>>, %arg6: memref<8x1xf32, #tpu.memory_space<vmem>>) attributes {dimension_semantics = [#tpu.dimension_semantics<parallel>, #tpu.dimension_semantics<arbitrary>], iteration_bounds = array<i64: 1, 2>, scalar_prefetch = 0 : i64, scratch_operands = 2 : i64, tpu.core_type = #tpu.core_type<tc>, window_params = [{transform_indices = @transform_0, window_bounds = array<i64: 8, 1>}, {transform_indices = @transform_1, window_bounds = array<i64: 8, 32>}, {transform_indices = @transform_2, window_bounds = array<i64: 8, 128>}]} {
    %c0_i32 = arith.constant 0 : i32
    %0 = arith.cmpi eq, %arg1, %c0_i32 : i32
    %1 = arith.extui %0 : i1 to i32
    %c0_i32_0 = arith.constant 0 : i32
    %2 = arith.cmpi ne, %1, %c0_i32_0 : i32
    scf.if %2 {
      %cst_18 = arith.constant 0.000000e+00 : f32
      %37 = vector.broadcast %cst_18 : f32 to vector<8x1xf32>
      %c0_19 = arith.constant 0 : index
      %c0_20 = arith.constant 0 : index
      %38 = vector.load %arg5[%c0_19, %c0_20] : memref<8x1xf32, #tpu.memory_space<vmem>>, vector<8x1xf32>
      tpu.vector_store %arg5[%c0_19, %c0_20], %37 {strides = array<i32>} : memref<8x1xf32, #tpu.memory_space<vmem>>, vector<8x1xf32>,
      %cst_21 = arith.constant 0.000000e+00 : f32
      %39 = vector.broadcast %cst_21 : f32 to vector<8x1xf32>
      %c0_22 = arith.constant 0 : index
      %c0_23 = arith.constant 0 : index
      %40 = vector.load %arg6[%c0_22, %c0_23] : memref<8x1xf32, #tpu.memory_space<vmem>>, vector<8x1xf32>
      tpu.vector_store %arg6[%c0_22, %c0_23], %39 {strides = array<i32>} : memref<8x1xf32, #tpu.memory_space<vmem>>, vector<8x1xf32>,
    } else {
    }
    %c0 = arith.constant 0 : index
    %c0_1 = arith.constant 0 : index
    %3 = vector.load %arg3[%c0, %c0_1] : memref<8x32xf32, #tpu.memory_space<vmem>>, vector<8x32xf32>
    %cst = arith.constant dense<0xFF800000> : vector<8xf32>
    %4 = vector.multi_reduction <maximumf>, %3, %cst [1] : vector<8x32xf32> to vector<8xf32>
    %5 = vector.shape_cast %4 : vector<8xf32> to vector<8x1xf32>
    %6 = vector.broadcast %5 : vector<8x1xf32> to vector<8x32xf32>
    %7 = arith.subf %3, %6 : vector<8x32xf32>
    %8 = math.exp %7 : vector<8x32xf32>
    %cst_2 = arith.constant dense<0.000000e+00> : vector<8xf32>
    %9 = vector.multi_reduction <add>, %8, %cst_2 [1] : vector<8x32xf32> to vector<8xf32>
    %10 = vector.shape_cast %9 : vector<8xf32> to vector<8x1xf32>
    %11 = math.log %10 : vector<8x1xf32>
    %12 = arith.addf %5, %11 : vector<8x1xf32>
    %cst_3 = arith.constant dense<0.000000e+00> : vector<8xf32>
    %13 = vector.multi_reduction <add>, %3, %cst_3 [1] : vector<8x32xf32> to vector<8xf32>
    %14 = vector.shape_cast %13 : vector<8xf32> to vector<8x1xf32>
    %cst_4 = arith.constant 3.200000e+01 : f32
    %15 = vector.broadcast %cst_4 : f32 to vector<8x1xf32>
    %16 = arith.mulf %15, %12 : vector<8x1xf32>
    %17 = arith.subf %16, %14 : vector<8x1xf32>
    %c0_5 = arith.constant 0 : index
    %c0_6 = arith.constant 0 : index
    %18 = vector.load %arg2[%c0_5, %c0_6] : memref<8x1xi32, #tpu.memory_space<vmem>>, vector<8x1xi32>
    %19 = tpu.iota {dimensions = array<i32: 1>} : vector<1x32xi32>
    %20 = vector.broadcast %19 : vector<1x32xi32> to vector<8x32xi32>
    %21 = vector.broadcast %18 : vector<8x1xi32> to vector<8x32xi32>
    %22 = arith.cmpi eq, %20, %21 : vector<8x32xi32>
    %cst_7 = arith.constant 0.000000e+00 : f32
    %23 = vector.broadcast %cst_7 : f32 to vector<8x32xf32>
    %24 = arith.select %22, %3, %23 : vector<8x32xi1>, vector<8x32xf32>
    %cst_8 = arith.constant dense<0.000000e+00> : vector<8xf32>
    %25 = vector.multi_reduction <add>, %24, %cst_8 [1] : vector<8x32xf32> to vector<8xf32>
    %26 = vector.shape_cast %25 : vector<8xf32> to vector<8x1xf32>
    %27 = arith.subf %12, %26 : vector<8x1xf32>
    %c0_9 = arith.constant 0 : index
    %c0_10 = arith.constant 0 : index
    %28 = vector.load %arg5[%c0_9, %c0_10] : memref<8x1xf32, #tpu.memory_space<vmem>>, vector<8x1xf32>
    %29 = arith.addf %28, %17 : vector<8x1xf32>
    %c0_11 = arith.constant 0 : index
    %c0_12 = arith.constant 0 : index
    %30 = vector.load %arg5[%c0_11, %c0_12] : memref<8x1xf32, #tpu.memory_space<vmem>>, vector<8x1xf32>
    tpu.vector_store %arg5[%c0_11, %c0_12], %29 {strides = array<i32>} : memref<8x1xf32, #tpu.memory_space<vmem>>, vector<8x1xf32>,
    %c0_13 = arith.constant 0 : index
    %c0_14 = arith.constant 0 : index
    %31 = vector.load %arg6[%c0_13, %c0_14] : memref<8x1xf32, #tpu.memory_space<vmem>>, vector<8x1xf32>
    %32 = arith.addf %31, %27 : vector<8x1xf32>
    %c0_15 = arith.constant 0 : index
    %c0_16 = arith.constant 0 : index
    %33 = vector.load %arg6[%c0_15, %c0_16] : memref<8x1xf32, #tpu.memory_space<vmem>>, vector<8x1xf32>
    tpu.vector_store %arg6[%c0_15, %c0_16], %32 {strides = array<i32>} : memref<8x1xf32, #tpu.memory_space<vmem>>, vector<8x1xf32>,
    %c1_i32 = arith.constant 1 : i32
    %34 = arith.cmpi eq, %arg1, %c1_i32 : i32
    %35 = arith.extui %34 : i1 to i32
    %c0_i32_17 = arith.constant 0 : i32
    %36 = arith.cmpi ne, %35, %c0_i32_17 : i32
    scf.if %36 {
      %c0_18 = arith.constant 0 : index
      %c0_19 = arith.constant 0 : index
      %37 = vector.load %arg5[%c0_18, %c0_19] : memref<8x1xf32, #tpu.memory_space<vmem>>, vector<8x1xf32>
      %38 = vector.shape_cast %37 : vector<8x1xf32> to vector<1x8x1xf32>
      %cst_20 = arith.constant dense<0.000000e+00> : vector<1xf32>
      %39 = vector.multi_reduction <add>, %38, %cst_20 [1, 2] : vector<1x8x1xf32> to vector<1xf32>
      %40 = vector.shape_cast %39 : vector<1xf32> to vector<1x1x1xf32>
      %41 = vector.extract %40[0, 0, 0] : f32 from vector<1x1x1xf32>
      %c0_21 = arith.constant 0 : index
      %c0_22 = arith.constant 0 : index
      %42 = vector.load %arg6[%c0_21, %c0_22] : memref<8x1xf32, #tpu.memory_space<vmem>>, vector<8x1xf32>
      %43 = vector.shape_cast %42 : vector<8x1xf32> to vector<1x8x1xf32>
      %cst_23 = arith.constant dense<0.000000e+00> : vector<1xf32>
      %44 = vector.multi_reduction <add>, %43, %cst_23 [1, 2] : vector<1x8x1xf32> to vector<1xf32>
      %45 = vector.shape_cast %44 : vector<1xf32> to vector<1x1x1xf32>
      %46 = vector.extract %45[0, 0, 0] : f32 from vector<1x1x1xf32>
      %47 = tpu.iota {dimensions = array<i32: 0>} : vector<8x128xi32>
      %48 = tpu.iota {dimensions = array<i32: 1>} : vector<8x128xi32>
      %c0_i32_24 = arith.constant 0 : i32
      %49 = vector.broadcast %c0_i32_24 : i32 to vector<8x128xi32>
      %50 = arith.cmpi eq, %47, %49 : vector<8x128xi32>
      %c0_i32_25 = arith.constant 0 : i32
      %51 = vector.broadcast %c0_i32_25 : i32 to vector<8x128xi32>
      %52 = arith.cmpi eq, %48, %51 : vector<8x128xi32>
      %53 = arith.andi %50, %52 : vector<8x128xi1>
      %c0_i32_26 = arith.constant 0 : i32
      %54 = vector.broadcast %c0_i32_26 : i32 to vector<8x128xi32>
      %55 = arith.cmpi eq, %47, %54 : vector<8x128xi32>
      %c1_i32_27 = arith.constant 1 : i32
      %56 = vector.broadcast %c1_i32_27 : i32 to vector<8x128xi32>
      %57 = arith.cmpi eq, %48, %56 : vector<8x128xi32>
      %58 = arith.andi %55, %57 : vector<8x128xi1>
      %cst_28 = arith.constant 0.000000e+00 : f32
      %59 = vector.broadcast %46 : f32 to vector<8x128xf32>
      %60 = vector.broadcast %cst_28 : f32 to vector<8x128xf32>
      %61 = arith.select %58, %59, %60 : vector<8x128xi1>, vector<8x128xf32>
      %62 = vector.broadcast %41 : f32 to vector<8x128xf32>
      %63 = arith.select %53, %62, %61 : vector<8x128xi1>, vector<8x128xf32>
      %c0_29 = arith.constant 0 : index
      %c0_30 = arith.constant 0 : index
      %64 = vector.load %arg4[%c0_29, %c0_30] : memref<8x128xf32, #tpu.memory_space<vmem>>, vector<8x128xf32>
      tpu.vector_store %arg4[%c0_29, %c0_30], %63 {strides = array<i32>} : memref<8x128xf32, #tpu.memory_space<vmem>>, vector<8x128xf32>,
    } else {
    }
    return
  }
  func.func @transform_0(%arg0: i32, %arg1: i32) -> (i32, i32) {
    %c2_i32 = arith.constant 2 : i32
    %0 = arith.muli %arg0, %c2_i32 : i32
    %1 = arith.addi %0, %arg1 : i32
    %c0_i32 = arith.constant 0 : i32
    %c0_i32_0 = arith.constant 0 : i32
    return %1, %c0_i32 : i32, i32
  }
  func.func @transform_1(%arg0: i32, %arg1: i32) -> (i32, i32) {
    %c2_i32 = arith.constant 2 : i32
    %0 = arith.muli %arg0, %c2_i32 : i32
    %1 = arith.addi %0, %arg1 : i32
    %c0_i32 = arith.constant 0 : i32
    %c0_i32_0 = arith.constant 0 : i32
    return %1, %c0_i32 : i32, i32
  }
  func.func @transform_2(%arg0: i32, %arg1: i32) -> (i32, i32) {
    %c0_i32 = arith.constant 0 : i32
    %c0_i32_0 = arith.constant 0 : i32
    return %arg0, %c0_i32 : i32, i32
  }
}

</mosaic_0001>

<bundles_post_ra>
// kernel: cross_entropy_label_smooth.1
= control target key start
LH: loop header
LB: loop body
LE: loop exit
PB: predicated region body
PF: predicated region fallthrough
CT: control target
= control target key end

     0   :  { %s437_s9 = smov 0   ;;  %s439_s10 = smov 0   ;;  %s483_s0 = inlined_call_operand.vmem [shape: s32[16,1], index: 0, kind: input, shape index: {}]   ;;  %s484_s1 = inlined_call_operand.vmem [shape: f32[16,32], index: 1, kind: input, shape index: {}]   ;;  %s485_s2 = inlined_call_operand.vmem [shape: f32[8,128], index: 2, kind: output, shape index: {}]  }
   0x1   :  { %s441_s11 = smov 0  }
   0x2 LB: > { %s21_s12 = sadd.s32 1, %s414_s10  ;;  %p353_p0 = scmp.ge.s32.totalorder %s418_s11, 1  ;;  %s418_s11 = sphi %s441_s11, %s12_s11   ;;  %s414_s10 = sphi %s439_s10, %s487_s10   ;;  %s410_s9 = sphi %s437_s9, %s486_s9  }
   0x3   : > { %p22_p1 = scmp.ge.s32.totalorder %s21_s12, 2  ;;  %p148_p2 = scmp.lt.s32.totalorder %s418_s11, 3 }
   0x5   : > { %s489_s12 = smov (%p22_p1, %s21_s12), 0  ;;  %p149_p3 = pnand %p353_p0, %p148_p2 }
   0x6   : > { %p178_p4 = scmp.lt.s32.totalorder (!%p149_p3), %s410_s9, 1  ;;  %p356_p5 = scmp.ne.s32.totalorder (!%p149_p3), %s410_s9, 0 }
   0x7   : > { %152 = sbr.rel (%p149_p3) target bundleno = 566 (0x236), region = 28 }
   0xe   : > { %s179_s13 = scalar_select %p178_p4, %s410_s9, 1 }
   0xf   : > { %199 = sbr.rel (%p356_p5) target bundleno = 22 (0x16), region = 32  ;;  %vm200_vm0 = vcmask (!%p356_p5), 7168   ;;  %v420_v0 = vmov (!%p356_p5), 0.0  }
  0x10   : > { %s354_s14 = sshll.u32 %s179_s13, 3  ;;  %201 = vst.msk [vmem:[#allocation2] sm:$0xff] (!%p356_p5), %vm200_vm0, %v420_v0  ;;  %202 = vst.msk [vmem:[#allocation3] sm:$0xff] (!%p356_p5), %vm200_vm0, %v420_v0 }
  0x11   : > { %s181_s17 = scalar_lea.vmem %s483_s0, %s354_s14  ;;  %s189_s20 = scalar_lea.vmem %s484_s1, %s354_s14 }
  0x16 PF: > { %v203_v1 = vld [vmem:[%s189_s20] sm:$0xff]  ;;  %vm204_vm1 = vcmask 261120   ;;  %v421_v3 = vmov 0   ;;  %v223_v8 = vlaneseq  ;;  %vm236_vm3 = vcmask 7168   ;;  %p357_p6 = scmp.ne.s32.totalorder %s410_s9, 1 }
  0x17   : > { %v205_v2 = vsel %vm204_vm1, %v203_v1, -inf  ;;  %391 = vset.pattern.permute.xlu0 %v421_v3  ;;  %v222_v4 = vld [vmem:[%s181_s17] sm:$0xff]  ;;  %v217_v13 = vsel %vm204_vm1, %v203_v1, 0.0  ;;  %v238_v22 = vld [vmem:[#allocation3] sm:$0xff] }
  0x18   : > { %206 = vmax.xlane.f32.xlu0 %v205_v2  ;;  %v224_v9 = vand.u32 127, %v223_v8  ;;  %v234_v25 = vld [vmem:[#allocation2] sm:$0xff]  ;;  %v268_v47 = vshrl.u32 (!%p357_p6), %v223_v8, 7 }
  0x1a   : > { %vm269_vm4 = vcmp.eq.s32.totalorder (!%p357_p6), %v268_v47, 0  ;;  %vm272_vm5 = vcmp.eq.s32.totalorder (!%p357_p6), %v224_v9, 1  ;;  %vm270_vm6 = vcmp.eq.s32.totalorder (!%p357_p6), %v224_v9, 0 }
  0x1b   : > { %vm273_vm7 = vmand (!%p357_p6), %vm269_vm4, %vm272_vm5 }
  0x1c   : > { %vm271_vm8 = vmand (!%p357_p6), %vm269_vm4, %vm270_vm6 }
  0x2e   : > { %226 = vperm.xlu0 %391, %v222_v4  }
  0xa5   : > { %v207_v5 = vpop.xlane.xlu0 %206 }
  0xa6   : > { %v208_v6 = vsub.f32 %v203_v1, %v207_v5 }
  0xa8   : > { %v209_v7 = vmul.f32 1.442695, %v208_v6 }
  0xaa   : > { %392 = vpow2.f32 %v209_v7 }
  0xad   : > { %v227_v10 = vpop.permute.xlu0 %226 }
  0xae   : > { %vm228_vm2 = vcmp.eq.s32.totalorder %v224_v9, %v227_v10 }
  0xaf   : > { %v229_v14 = vsel %vm228_vm2, %v203_v1, 0.0 }
  0xb0   : > { %v230_v15 = vsel %vm204_vm1, %v229_v14, 0.0 }
  0xb4   : > { %v393_v11 = vpop.eup %392 }
  0xb5   : > { %v211_v12 = vsel %vm204_vm1, %v393_v11, 0.0 }
  0xb6   : > { %212 = vadd.xlane.f32.xlu1 %v211_v12 }
  0xba   : > { %218 = vadd.xlane.f32.xlu1 %v217_v13 }
  0xbe   : > { %231 = vadd.xlane.f32.xlu1 %v230_v15 }
 0x143   : > { %v213_v16 = vpop.xlane.xlu1 %212 }
 0x144   : > { %394 = vlog2.f32 %v213_v16 }
 0x147   : > { %v219_v17 = vpop.xlane.xlu1 %218 }
 0x14b   : > { %v232_v20 = vpop.xlane.xlu1 %231 }
 0x14e   : > { %v395_v18 = vpop.eup %394 }
 0x14f   : > { %v215_v19 = vmul.f32 0.6931472, %v395_v18 }
 0x151   : > { %v216_v21 = vadd.f32 %v215_v19, %v207_v5 }
 0x153   : > { %v220_v23 = vmul.f32 32.0, %v216_v21  ;;  %v233_v24 = vsub.f32 %v216_v21, %v232_v20  ;;  %244 = sbr.rel (%p357_p6) target bundleno = 566 (0x236), region = 36 }
 0x155   : > { %v221_v26 = vsub.f32 %v220_v23, %v219_v17  ;;  %v239_v27 = vadd.f32 %v238_v22, %v233_v24 }
 0x157   : > { %v235_v28 = vadd.f32 %v234_v25, %v221_v26  ;;  %240 = vst.msk [vmem:[#allocation3] sm:$0xff] %vm236_vm3, %v239_v27 }
 0x159   : > { %237 = vst.msk [vmem:[#allocation2] sm:$0xff] %vm236_vm3, %v235_v28 }
 0x15e   : > { %v256_v30 = vld [vmem:[#allocation3] sm:$0xff] }
 0x15f   : > { %v257_v32 = vsel %vm236_vm3, %v256_v30, 0.0 }
 0x160   : > { %v245_v29 = vld [vmem:[#allocation2] sm:$0xff] }
 0x161   : > { %v246_v31 = vsel %vm236_vm3, %v245_v29, 0.0 }
 0x162   : > { %247 = vadd.xlane.f32.xlu0 %v246_v31 }
 0x166   : > { %258 = vadd.xlane.f32.xlu0 %v257_v32 }
 0x1ef   : > { %v248_v33 = vpop.xlane.xlu0 %247 }
 0x1f0   : > { %v249_v34 = vrot.slane %v248_v33, 4 }
 0x1f2   : > { %v250_v35 = vadd.f32 %v249_v34, %v248_v33 }
 0x1f3   : > { %v259_v36 = vpop.xlane.xlu0 %258 }
 0x1f4   : > { %v251_v37 = vrot.slane %v250_v35, 2  ;;  %v260_v38 = vrot.slane %v259_v36, 4 }
 0x1f6   : > { %v261_v39 = vadd.f32 %v260_v38, %v259_v36  ;;  %v252_v40 = vadd.f32 %v251_v37, %v250_v35 }
 0x1f8   : > { %v262_v41 = vrot.slane %v261_v39, 2  ;;  %v253_v42 = vrot.slane %v252_v40, 1 }
 0x1fa   : > { %v263_v43 = vadd.f32 %v262_v41, %v261_v39  ;;  %v254_v44 = vadd.f32 %v253_v42, %v252_v40 }
 0x1fc   : > { %361 = vpush %v254_v44  ;;  %v264_v45 = vrot.slane %v263_v43, 1 }
 0x1fe   : > { %v265_v46 = vadd.f32 %v264_v45, %v263_v43 }
 0x200   : > { %363 = vpush %v265_v46 }
 0x22d   : > { %s362_s21 = spop %361 }
 0x22e   : > { %v276_v49 = vstv %s362_s21 }
 0x231   : > { %s364_s22 = spop %363 }
 0x232   : > { %v274_v48 = vstv %s364_s22 }
 0x233   : > { %v275_v50 = vsel %vm273_vm7, %v274_v48, 0.0 }
 0x234   : > { %v277_v51 = vsel %vm271_vm8, %v276_v49, %v275_v50 }
 0x235   : > { %278 = vst [vmem:[%s485_s2] sm:$0xff] %v277_v51 }
 0x236 PF: > { %s12_s11 = sadd.s32 1, %s418_s11   ;;  %s486_s9 = smov %s414_s10 }
 0x237   : > { %p9_p7 = scmp.ge.s32.totalorder %s12_s11, 4   ;;  %s487_s10 = smov %s489_s12 }
 0x239   :  { %11 = sbr.rel (!%p9_p7) target bundleno = 2 (0x2), region = 69 }

</bundles_post_ra>
